<compile_context>
chip_gen: v7x
topology: tpu7x:2x2x1
jax: 0.10.0
libtpu: 0.0.40
codegen_flags: <defaults>
</compile_context>

<pallas_src>
import functools

import jax
import jax.numpy as jnp
from jax import lax
from jax.experimental import pallas as pl
from jax.experimental.pallas import tpu as pltpu


# ---------------------------------------------------------------------------
# Helpers
# ---------------------------------------------------------------------------
def _round_up(x, m):
    return ((x + m - 1) // m) * m


def _pick_tile(dim_p, max_tile, align):
    """Largest multiple of `align`, <= max_tile, that divides dim_p.

    dim_p is already a multiple of `align`, so this always succeeds and the
    only padding ever introduced is the (sublane, 128) layout rounding."""
    if dim_p <= max_tile:
        return dim_p
    t = (max_tile // align) * align
    while t > align:
        if dim_p % t == 0:
            return t
        t -= align
    return align


def _vmem_capacity_bytes():
    try:
        return int(pltpu.get_tpu_info().vmem_capacity_bytes)
    except Exception:
        return 64 << 20  # conservative (v7x-sized) fallback


# ---------------------------------------------------------------------------
# Kernel factory
# ---------------------------------------------------------------------------
def _make_linear_kernel(use_bias, acc_in_out, weight_is_transposed, compute_dtype):
    # x block is (tm, tk).  Weight block is (tn, tk) for the PyTorch layout
    # (NT contraction, consumed directly by the MXU) or (tk, tn) when the
    # caller pre-transposed the weight (standard contraction).
    if weight_is_transposed:
        dims = (((1,), (0,)), ((), ()))
    else:
        dims = (((1,), (1,)), ((), ()))

    def _compute(x_ref, w_ref, b_ref, o_ref, acc_ref):
        k = pl.program_id(2)
        xa = x_ref[...]
        wa = w_ref[...]
        if compute_dtype is not None:
            xa = xa.astype(compute_dtype)
            wa = wa.astype(compute_dtype)
        part = lax.dot_general(
            xa, wa, dimension_numbers=dims, preferred_element_type=jnp.float32)

        acc = o_ref if acc_in_out else acc_ref

        @pl.when(k == 0)
        def _first():              # write, don't zero-then-add
            acc[...] = part

        @pl.when(k > 0)
        def _accumulate():
            acc[...] = acc[...] + part

        if use_bias or not acc_in_out:
            @pl.when(k == pl.num_programs(2) - 1)
            def _finalize():
                res = acc[...]
                if use_bias:
                    res = res + b_ref[...].astype(jnp.float32)  # (1, tn) broadcasts
                o_ref[...] = res.astype(o_ref.dtype)

    if use_bias and not acc_in_out:
        def kernel(x_ref, w_ref, b_ref, o_ref, acc_ref):
            _compute(x_ref, w_ref, b_ref, o_ref, acc_ref)
    elif use_bias:
        def kernel(x_ref, w_ref, b_ref, o_ref):
            _compute(x_ref, w_ref, b_ref, o_ref, None)
    elif not acc_in_out:
        def kernel(x_ref, w_ref, o_ref, acc_ref):
            _compute(x_ref, w_ref, None, o_ref, acc_ref)
    else:
        def kernel(x_ref, w_ref, o_ref):
            _compute(x_ref, w_ref, None, o_ref, None)
    return kernel


# ---------------------------------------------------------------------------
# Wrapper
# ---------------------------------------------------------------------------
@functools.partial(
    jax.jit,
    static_argnames=("use_bias", "weight_is_transposed", "compute_dtype"))
def linear_forward(x, weight, bias=None, *, use_bias=True,
                   weight_is_transposed=False, compute_dtype=None):
    """Equivalent of torch.nn.Linear forward: y = x @ W^T + b.

    Args:
      x:      (..., in_features)
      weight: (out_features, in_features)  [PyTorch layout, default]
              or (in_features, out_features) if weight_is_transposed=True
              (pre-transpose a static parameter once, outside the hot path).
      bias:   (out_features,) or None
      compute_dtype: optional MXU input dtype (e.g. jnp.bfloat16); accumulation
              stays float32.  None keeps exact input-dtype math.
    Returns:
      (..., out_features), same dtype as x.
    """
    if weight_is_transposed:
        in_features, out_features = weight.shape
    else:
        out_features, in_features = weight.shape
    lead_shape = x.shape[:-1]
    M = 1
    for d in lead_shape:
        M *= d
    K, N = in_features, out_features

    x_isz = jnp.dtype(x.dtype).itemsize
    w_isz = jnp.dtype(weight.dtype).itemsize
    o_dtype = x.dtype
    o_isz = jnp.dtype(o_dtype).itemsize
    b_isz = jnp.dtype(bias.dtype).itemsize if use_bias else 0
    # f32 outputs: accumulate directly into o_ref, no scratch accumulator.
    acc_in_out = jnp.dtype(o_dtype) == jnp.dtype(jnp.float32)

    # ---- generation-aware tiling ------------------------------------------
    vmem_cap = _vmem_capacity_bytes()
    budget_cap = min(max(vmem_cap - (8 << 20), 32 << 20), 100 << 20)
    max_tk = 2048 if vmem_cap >= (100 << 20) else 1024   # v5e/v6e vs v7x

    sub = 8 if x_isz >= 4 else 16
    M_p = _round_up(M, sub)
    K_p = _round_up(K, 128)
    N_p = _round_up(N, 128)

    tm = _pick_tile(M_p, 512, sub)
    tn = _pick_tile(N_p, 512, 128)
    tk = _pick_tile(K_p, max_tk, 128)

    # Megacore: ensure >= 2 independent (i, j) tiles when the output can split.
    if (M_p // tm) * (N_p // tn) == 1 and tn % 256 == 0:
        tn //= 2

    grid = (M_p // tm, N_p // tn, K_p // tk)
    gm, gn, gk = grid

    # ---- pad only up to the (sublane, 128) rounding -------------------------
    x2d = x.reshape(M, K)
    if (M_p, K_p) != (M, K):
        x2d = jnp.pad(x2d, ((0, M_p - M), (0, K_p - K)))
    w = weight
    if weight_is_transposed:
        if (K_p, N_p) != (K, N):
            w = jnp.pad(w, ((0, K_p - K), (0, N_p - N)))
        w_spec = pl.BlockSpec((tk, tn), lambda i, j, k: (k, j))
    else:
        if (N_p, K_p) != (N, K):
            w = jnp.pad(w, ((0, N_p - N), (0, K_p - K)))
        w_spec = pl.BlockSpec((tn, tk), lambda i, j, k: (j, k))

    x_spec = pl.BlockSpec((tm, tk), lambda i, j, k: (i, k))
    o_spec = pl.BlockSpec((tm, tn), lambda i, j, k: (i, j))

    in_specs = [x_spec, w_spec]
    operands = [x2d, w]
    if use_bias:
        b2d = bias.reshape(1, N)
        if N_p != N:
            b2d = jnp.pad(b2d, ((0, 0), (0, N_p - N)))
        in_specs.append(pl.BlockSpec((1, tn), lambda i, j, k: (0, j)))
        operands.append(b2d)

    scratch = [] if acc_in_out else [pltpu.VMEM((tm, tn), jnp.float32)]

    # ---- VMEM limit from the real (double-buffered) tile footprint ---------
    fp = (2 * tm * tk * x_isz + 2 * tn * tk * w_isz + 2 * tm * tn * o_isz
          + (2 * tn * b_isz if use_bias else 0)
          + (0 if acc_in_out else tm * tn * 4))
    vmem_limit = int(max(32 << 20, min(2 * fp + (8 << 20), budget_cap)))

    compiler_params = pltpu.CompilerParams(
        dimension_semantics=("parallel", "parallel", "arbitrary"),
        vmem_limit_bytes=vmem_limit,
    )
    # Honest scheduler hint: padded dims + re-streaming factors.
    cost = pl.CostEstimate(
        flops=2 * M_p * N_p * K_p + (M_p * N_p if use_bias else 0),
        transcendentals=0,
        bytes_accessed=(gn * M_p * K_p * x_isz          # x re-read per N tile
                        + gm * N_p * K_p * w_isz        # w re-read per M tile
                        + M_p * N_p * o_isz
                        + (gm * N_p * b_isz if use_bias else 0)),
    )

    kernel = _make_linear_kernel(use_bias, acc_in_out, weight_is_transposed,
                                 compute_dtype)
    out = pl.pallas_call(
        kernel,
        out_shape=jax.ShapeDtypeStruct((M_p, N_p), o_dtype),
        grid_spec=pltpu.PrefetchScalarGridSpec(
            num_scalar_prefetch=0,
            grid=grid,
            in_specs=in_specs,
            out_specs=o_spec,
            scratch_shapes=scratch,
        ),
        compiler_params=compiler_params,
        cost_estimate=cost,
    )(*operands)

    out = out[:M, :N]
    return out.reshape(*lead_shape, N)


# ---------------------------------------------------------------------------
# Param init (matches nn.Linear's uniform(-1/sqrt(in), 1/sqrt(in)) bounds)
# ---------------------------------------------------------------------------
def init_linear_params(key, in_features, out_features, use_bias=True,
                       dtype=jnp.float32):
    kw, kb = jax.random.split(key)
    bound = 1.0 / (in_features ** 0.5)
    weight = jax.random.uniform(
        kw, (out_features, in_features), dtype=dtype, minval=-bound, maxval=bound)
    bias = None
    if use_bias:
        bias = jax.random.uniform(
            kb, (out_features,), dtype=dtype, minval=-bound, maxval=bound)
    return weight, bias


if __name__ == "__main__":
    key = jax.random.PRNGKey(0)
    k_x1, k_p1, k_x2, k_p2 = jax.random.split(key, 4)

    # --- Test 1: small module-shaped case (batch=2, seq=8, in=32, out=64) ---
    batch, seq, in_f, out_f = 2, 8, 32, 64
    x1 = jax.random.normal(k_x1, (batch, seq, in_f), dtype=jnp.float32)
    w1, b1 = init_linear_params(k_p1, in_f, out_f, True)
    y1 = jax.block_until_ready(linear_forward(x1, w1, b1, use_bias=True))
    ref1 = x1 @ w1.T + b1
    assert y1.shape == (batch, seq, out_f)
    assert jnp.allclose(y1, ref1, atol=1e-5, rtol=1e-5)

    # --- Test 2: ragged K/N; forces multi-step K accumulation (f32-into-o_ref path) ---
    rows2, in2, out2 = 16, 2304, 384
    x2 = jax.random.normal(k_x2, (rows2, in2), dtype=jnp.float32)
    w2, b2 = init_linear_params(k_p2, in2, out2, True)
    y2 = jax.block_until_ready(linear_forward(x2, w2, b2, use_bias=True))
    ref2 = x2 @ w2.T + b2
    assert y2.shape == (rows2, out2)
    assert jnp.allclose(y2, ref2, atol=1e-3, rtol=1e-3)

    # --- Test 3: no-bias path with weight pre-transposed to (K, N) layout ---
    y3 = jax.block_until_ready(
        linear_forward(x2, w2.T, None, use_bias=False, weight_is_transposed=True))
    assert jnp.allclose(y3, x2 @ w2.T, atol=1e-3, rtol=1e-3)

    # --- Test 4: bf16 activations/weights (scratch f32 accumulator path) ---
    x4 = x2.astype(jnp.bfloat16)
    w4 = w2.astype(jnp.bfloat16)
    b4 = b2.astype(jnp.bfloat16)
    y4 = jax.block_until_ready(linear_forward(x4, w4, b4, use_bias=True))
    ref4 = (x4.astype(jnp.float32) @ w4.astype(jnp.float32).T
            + b4.astype(jnp.float32)).astype(jnp.bfloat16)
    assert y4.dtype == jnp.bfloat16
    assert jnp.allclose(y4.astype(jnp.float32), ref4.astype(jnp.float32),
                        atol=5e-2, rtol=5e-2)

    print("KERNEL_OK")
</pallas_src>

<mosaic_0001>
module attributes {stable_mosaic.version = 11 : i64} {
  func.func @kernel(%arg0: i32, %arg1: i32, %arg2: i32, %arg3: memref<16x128xf32, #tpu.memory_space<vmem>>, %arg4: memref<128x128xf32, #tpu.memory_space<vmem>>, %arg5: memref<1x128xf32, #tpu.memory_space<vmem>>, %arg6: memref<16x128xf32, #tpu.memory_space<vmem>>) attributes {dimension_semantics = [#tpu.dimension_semantics<parallel>, #tpu.dimension_semantics<parallel>, #tpu.dimension_semantics<arbitrary>], iteration_bounds = array<i64: 1, 1, 1>, scalar_prefetch = 0 : i64, scratch_operands = 0 : i64, tpu.core_type = #tpu.core_type<tc>, window_params = [{transform_indices = @transform_0, window_bounds = array<i64: 16, 128>}, {transform_indices = @transform_1, window_bounds = array<i64: 128, 128>}, {transform_indices = @transform_2, window_bounds = array<i64: 1, 128>}, {transform_indices = @transform_3, window_bounds = array<i64: 16, 128>}]} {
    %c0 = arith.constant 0 : index
    %c0_0 = arith.constant 0 : index
    %0 = vector.load %arg3[%c0, %c0_0] : memref<16x128xf32, #tpu.memory_space<vmem>>, vector<16x128xf32>
    %c0_1 = arith.constant 0 : index
    %c0_2 = arith.constant 0 : index
    %1 = vector.load %arg4[%c0_1, %c0_2] : memref<128x128xf32, #tpu.memory_space<vmem>>, vector<128x128xf32>
    %cst = arith.constant dense<0.000000e+00> : vector<16x128xf32>
    %2 = tpu.matmul %0, %1, %cst {dimension_numbers = #tpu.dot_dimension_numbers<[1], [1], [0], [0], [0, 0, 1, 0], [], []>} : vector<16x128xf32>, vector<128x128xf32>, vector<16x128xf32> -> vector<16x128xf32>
    %c0_i32 = arith.constant 0 : i32
    %3 = arith.cmpi eq, %arg2, %c0_i32 : i32
    %4 = arith.extui %3 : i1 to i32
    %c0_i32_3 = arith.constant 0 : i32
    %5 = arith.cmpi ne, %4, %c0_i32_3 : i32
    scf.if %5 {
      %c0_8 = arith.constant 0 : index
      %c0_9 = arith.constant 0 : index
      %12 = vector.load %arg6[%c0_8, %c0_9] : memref<16x128xf32, #tpu.memory_space<vmem>>, vector<16x128xf32>
      tpu.vector_store %arg6[%c0_8, %c0_9], %2 {strides = array<i32>} : memref<16x128xf32, #tpu.memory_space<vmem>>, vector<16x128xf32>,
    } else {
    }
    %c0_i32_4 = arith.constant 0 : i32
    %6 = arith.cmpi sgt, %arg2, %c0_i32_4 : i32
    %7 = arith.extui %6 : i1 to i32
    %c0_i32_5 = arith.constant 0 : i32
    %8 = arith.cmpi ne, %7, %c0_i32_5 : i32
    scf.if %8 {
      %c0_8 = arith.constant 0 : index
      %c0_9 = arith.constant 0 : index
      %12 = vector.load %arg6[%c0_8, %c0_9] : memref<16x128xf32, #tpu.memory_space<vmem>>, vector<16x128xf32>
      %13 = arith.addf %12, %2 : vector<16x128xf32>
      %c0_10 = arith.constant 0 : index
      %c0_11 = arith.constant 0 : index
      %14 = vector.load %arg6[%c0_10, %c0_11] : memref<16x128xf32, #tpu.memory_space<vmem>>, vector<16x128xf32>
      tpu.vector_store %arg6[%c0_10, %c0_11], %13 {strides = array<i32>} : memref<16x128xf32, #tpu.memory_space<vmem>>, vector<16x128xf32>,
    } else {
    }
    %c0_i32_6 = arith.constant 0 : i32
    %9 = arith.cmpi eq, %arg2, %c0_i32_6 : i32
    %10 = arith.extui %9 : i1 to i32
    %c0_i32_7 = arith.constant 0 : i32
    %11 = arith.cmpi ne, %10, %c0_i32_7 : i32
    scf.if %11 {
      %c0_8 = arith.constant 0 : index
      %c0_9 = arith.constant 0 : index
      %12 = vector.load %arg6[%c0_8, %c0_9] : memref<16x128xf32, #tpu.memory_space<vmem>>, vector<16x128xf32>
      %c0_10 = arith.constant 0 : index
      %c0_11 = arith.constant 0 : index
      %13 = vector.load %arg5[%c0_10, %c0_11] : memref<1x128xf32, #tpu.memory_space<vmem>>, vector<1x128xf32>
      %14 = vector.broadcast %13 : vector<1x128xf32> to vector<16x128xf32>
      %15 = arith.addf %12, %14 : vector<16x128xf32>
      %c0_12 = arith.constant 0 : index
      %c0_13 = arith.constant 0 : index
      %16 = vector.load %arg6[%c0_12, %c0_13] : memref<16x128xf32, #tpu.memory_space<vmem>>, vector<16x128xf32>
      tpu.vector_store %arg6[%c0_12, %c0_13], %15 {strides = array<i32>} : memref<16x128xf32, #tpu.memory_space<vmem>>, vector<16x128xf32>,
    } else {
    }
    return
  }
  func.func @transform_0(%arg0: i32, %arg1: i32, %arg2: i32) -> (i32, i32) {
    %c0_i32 = arith.constant 0 : i32
    return %arg0, %arg2 : i32, i32
  }
  func.func @transform_1(%arg0: i32, %arg1: i32, %arg2: i32) -> (i32, i32) {
    %c0_i32 = arith.constant 0 : i32
    return %arg1, %arg2 : i32, i32
  }
  func.func @transform_2(%arg0: i32, %arg1: i32, %arg2: i32) -> (i32, i32) {
    %c0_i32 = arith.constant 0 : i32
    %c0_i32_0 = arith.constant 0 : i32
    return %c0_i32, %arg1 : i32, i32
  }
  func.func @transform_3(%arg0: i32, %arg1: i32, %arg2: i32) -> (i32, i32) {
    %c0_i32 = arith.constant 0 : i32
    return %arg0, %arg1 : i32, i32
  }
}

</mosaic_0001>

<bundles_post_ra>
// kernel: linear_forward.1
= control target key start
LH: loop header
LB: loop body
LE: loop exit
PB: predicated region body
PF: predicated region fallthrough
CT: control target
= control target key end

     0   :  { %s312_s1 = inlined_call_operand.vmem [shape: f32[128,128], index: 1, kind: input, shape index: {}]   ;;  %s313_s0 = inlined_call_operand.vmem [shape: f32[16,128], index: 0, kind: input, shape index: {}]   ;;  %s314_s2 = inlined_call_operand.vmem [shape: f32[1,128], index: 2, kind: input, shape index: {}]   ;;  %s315_s3 = inlined_call_operand.vmem [shape: f32[16,128], index: 3, kind: output, shape index: {}]  }
   0x1   :  { %v16_v0 = vld [vmem:[%s312_s1] sm:$0xff]  ;;  %v17_v1 = vld [vmem:[%s312_s1 + $0x8] sm:$0xff]  ;;  %v18_v2 = vld [vmem:[%s312_s1 + $0x10] sm:$0xff] }
   0x2   :  { %v197_v3 = vpack.c.bf16 %v17_v1, %v16_v0  ;;  %v19_v4 = vld [vmem:[%s312_s1 + $0x18] sm:$0xff]  ;;  %v14_v6 = vld [vmem:[%s313_s0] sm:$0xff]  ;;  %v21_v8 = vld [vmem:[%s312_s1 + $0x28] sm:$0xff] }
   0x3   :  { %v201_v5 = vpack.c.bf16 %v19_v4, %v18_v2  ;;  %v20_v7 = vld [vmem:[%s312_s1 + $0x20] sm:$0xff]  ;;  %194 = vmatprep.mubr.f32.mxu0 %v14_v6  ;;  %v22_v10 = vld [vmem:[%s312_s1 + $0x30] sm:$0xff]  ;;  %v23_v11 = vld [vmem:[%s312_s1 + $0x38] sm:$0xff] }
   0x4   :  { %198 = vmatprep.subr.bf16.mxu0 %v197_v3  ;;  %v205_v9 = vpack.c.bf16 %v21_v8, %v20_v7  ;;  %v209_v12 = vpack.c.bf16 %v23_v11, %v22_v10  ;;  %v24_v13 = vld [vmem:[%s312_s1 + $0x40] sm:$0xff]  ;;  %v25_v14 = vld [vmem:[%s312_s1 + $0x48] sm:$0xff]  ;;  %v26_v16 = vld [vmem:[%s312_s1 + $0x50] sm:$0xff] }
   0x5   :  { %200 = vmatpush3.bf16.xpose.msra.mxu0 %v197_v3  ;;  %v213_v15 = vpack.c.bf16 %v25_v14, %v24_v13  ;;  %v27_v17 = vld [vmem:[%s312_s1 + $0x58] sm:$0xff]  ;;  %v28_v19 = vld [vmem:[%s312_s1 + $0x60] sm:$0xff]  ;;  %v29_v20 = vld [vmem:[%s312_s1 + $0x68] sm:$0xff] }
   0x6   :  { %202 = vmatprep.subr.bf16.mxu0 %v201_v5  ;;  %v217_v18 = vpack.c.bf16 %v27_v17, %v26_v16  ;;  %v221_v21 = vpack.c.bf16 %v29_v20, %v28_v19  ;;  %v30_v22 = vld [vmem:[%s312_s1 + $0x70] sm:$0xff]  ;;  %v31_v23 = vld [vmem:[%s312_s1 + $0x78] sm:$0xff]  ;;  %v15_v25 = vld [vmem:[%s313_s0 + $0x8] sm:$0xff] }
   0x7   :  { %v225_v24 = vpack.c.bf16 %v31_v23, %v30_v22  ;;  %v143_v26 = vld [vmem:[%s314_s2] ss:$0 sm:$0xff] }
   0xd   :  { %204 = vmatpush3.bf16.xpose.msra.mxu0 %v201_v5 }
   0xe   :  { %206 = vmatprep.subr.bf16.mxu0 %v205_v9 }
  0x15   :  { %208 = vmatpush3.bf16.xpose.msra.mxu0 %v205_v9 }
  0x16   :  { %210 = vmatprep.subr.bf16.mxu0 %v209_v12 }
  0x1d   :  { %212 = vmatpush3.bf16.xpose.msra.mxu0 %v209_v12 }
  0x1e   :  { %214 = vmatprep.subr.bf16.mxu0 %v213_v15 }
  0x25   :  { %216 = vmatpush3.bf16.xpose.msra.mxu0 %v213_v15 }
  0x26   :  { %218 = vmatprep.subr.bf16.mxu0 %v217_v18 }
  0x2d   :  { %220 = vmatpush3.bf16.xpose.msra.mxu0 %v217_v18 }
  0x2e   :  { %222 = vmatprep.subr.bf16.mxu0 %v221_v21 }
  0x35   :  { %224 = vmatpush3.bf16.xpose.msra.mxu0 %v221_v21 }
  0x36   :  { %226 = vmatprep.subr.bf16.mxu0 %v225_v24 }
  0x3d   :  { %228 = vmatpush3.bf16.xpose.msra.mxu0 %v225_v24 }
  0x44   :  { %195 = vmatmul.mubr.f32.vlgmr.msra.gmra.mrb[0].mxu0 %v15_v25 }
 0x117   :  { %v196_v27 = vpop.f32.mrb[0].mxu0 }
 0x118   :  { %v136_v28 = vadd.f32 %v196_v27, %v143_v26  ;;  %v98_v29 = vpop.f32.mrb[1].mxu0 }
 0x119   :  { %v135_v30 = vadd.f32 %v143_v26, %v98_v29 }
 0x11a   :  { %138 = vst [vmem:[%s315_s3 + $0x8] sm:$0xff] %v136_v28 }
 0x11b   :  { %137 = vst [vmem:[%s315_s3] sm:$0xff] %v135_v30 }

</bundles_post_ra>
